<compile_context>
chip_gen: v7x
topology: tpu7x:2x2x1
jax: 0.10.0
libtpu: 0.0.40
codegen_flags: <defaults>
</compile_context>

<pallas_src>
import jax
import jax.numpy as jnp
from jax.experimental import pallas as pl
from jax.experimental.pallas import tpu as pltpu

_LANE = 128
_SUBLANE = 8
_NEG_SLOPE = 0.01  # PyTorch nn.LeakyReLU default negative_slope


def _round_up(x, m):
    return (x + m - 1) // m * m


def _vmem_limit_bytes():
    """Generation-aware scoped-VMEM request: ~3/4 of physical, capped at 96 MiB."""
    phys = 64 * 1024 * 1024  # conservative fallback = v7x physical VMEM
    try:
        info = pltpu.get_tpu_info()
        phys = int(getattr(info, "vmem_capacity_bytes", phys))
    except Exception:
        pass
    return int(min(phys * 3 // 4, 96 * 1024 * 1024))


# ----------------------------------------------------------------------------
# Kernels
# ----------------------------------------------------------------------------
def _mlp_resident_kernel(x_ref, w1_ref, b1_ref, w2_ref, b2_ref, out_ref):
    """Weights VMEM-resident; one batch tile per grid step."""
    # In-kernel cast of x -> compute dtype (hidden under MXU/DMA; saves an HBM pass).
    x = x_ref[...].astype(w1_ref.dtype)
    h = jnp.dot(x, w1_ref[...], preferred_element_type=jnp.float32)
    h = h + b1_ref[...]                      # f32 epilogue (v5e-safe, no bf16 VPU)
    h = jnp.where(h > 0, h, _NEG_SLOPE * h)  # LeakyReLU
    o = jnp.dot(h.astype(w2_ref.dtype), w2_ref[...],
                preferred_element_type=jnp.float32)
    out_ref[...] = (o + b2_ref[...]).astype(out_ref.dtype)


def _mlp_htiled_kernel(x_ref, w1_ref, b1_ref, w2_ref, b2_ref, out_ref, acc_ref):
    """Hidden-dim-tiled fallback: w1 columns / w2 rows streamed, f32 accumulator."""
    hi = pl.program_id(1)

    @pl.when(hi == 0)
    def _init():
        acc_ref[...] = jnp.zeros_like(acc_ref)

    x = x_ref[...].astype(w1_ref.dtype)
    h = jnp.dot(x, w1_ref[...], preferred_element_type=jnp.float32)
    h = h + b1_ref[...]
    h = jnp.where(h > 0, h, _NEG_SLOPE * h)
    acc_ref[...] += jnp.dot(h.astype(w2_ref.dtype), w2_ref[...],
                            preferred_element_type=jnp.float32)

    @pl.when(hi == pl.num_programs(1) - 1)
    def _finalize():
        out_ref[...] = (acc_ref[...] + b2_ref[...]).astype(out_ref.dtype)


# ----------------------------------------------------------------------------
# Wrapper
# ----------------------------------------------------------------------------
def encode_mlp(x, w1, b1, w2, b2, *,
               compute_dtype=jnp.bfloat16,
               out_dtype=None,
               batch_tile=1024,
               h_tile=512,
               max_resident_weight_bytes=None):
    """Fused fc1 -> LeakyReLU -> fc2.

    x:  (B, D_in)
    w1: (D_in, H),   b1: (H,)      (PyTorch weight kept transposed: (in, out))
    w2: (H, D_out),  b2: (D_out,)
    Returns (B, D_out) in out_dtype (defaults to x.dtype).
    """
    B, D_in = x.shape
    H = w1.shape[1]
    D_out = w2.shape[1]
    out_dtype = x.dtype if out_dtype is None else out_dtype

    vmem_limit = _vmem_limit_bytes()
    c_item = jnp.dtype(compute_dtype).itemsize
    x_item = jnp.dtype(x.dtype).itemsize
    o_item = jnp.dtype(out_dtype).itemsize

    # Lane-dense output: zero-pad D_out to a multiple of 128 lanes (unmasked vst).
    D_out_p = _round_up(D_out, _LANE)

    # Path selection: weights-resident vs hidden-dim-tiled (v7x-safe fallback).
    if max_resident_weight_bytes is None:
        max_resident_weight_bytes = vmem_limit // 2
    weight_bytes_est = (D_in * H + H * D_out_p) * c_item
    use_h_tiling = weight_bytes_est > max_resident_weight_bytes

    if use_h_tiling:
        TH = min(_round_up(h_tile, _LANE), _round_up(H, _LANE))
        H_p = _round_up(H, TH)
    else:
        TH = None
        # Pad H only when it is big enough for MXU alignment to matter.
        H_p = _round_up(H, _LANE) if (H >= 512 and H % _LANE != 0) else H

    # One-time zero-padding of the (small) weights/biases; x is never padded.
    if H_p != H:
        w1 = jnp.pad(w1, ((0, 0), (0, H_p - H)))
        b1 = jnp.pad(b1, (0, H_p - H))
        w2 = jnp.pad(w2, ((0, H_p - H), (0, 0)))
    if D_out_p != D_out:
        w2 = jnp.pad(w2, ((0, 0), (0, D_out_p - D_out)))
        b2 = jnp.pad(b2, (0, D_out_p - D_out))

    w1_c = w1.astype(compute_dtype)
    w2_c = w2.astype(compute_dtype)
    b1_2d = b1.reshape(1, H_p).astype(jnp.float32)
    b2_2d = b2.reshape(1, D_out_p).astype(jnp.float32)

    # ---- batch-tile budget (accounts for the (TB, H) intermediate) --------
    if use_h_tiling:
        step_weight_bytes = 2 * (D_in * TH + TH * D_out_p) * c_item  # double-buffered
        per_row = (2 * D_in * x_item          # x double buffer
                   + 6 * TH                   # f32 fc1 intermediate + bf16 copy
                   + 4 * D_out_p              # f32 accumulator scratch
                   + 2 * D_out_p * o_item)    # out double buffer
    else:
        step_weight_bytes = (D_in * H_p + H_p * D_out_p) * c_item    # single-buffered
        per_row = (2 * D_in * x_item
                   + 6 * H_p
                   + 2 * D_out_p * o_item)
    slack = 2 * 1024 * 1024
    budget = max(vmem_limit - step_weight_bytes - slack, per_row * _SUBLANE)
    tb_cap = max((budget // per_row) // _SUBLANE * _SUBLANE, _SUBLANE)

    TB = min(_round_up(batch_tile, _SUBLANE), _round_up(B, _SUBLANE))
    if B >= 2 * _SUBLANE and pl.cdiv(B, TB) < 2:
        # v7x megacore: make sure the "parallel" batch axis has >= 2 steps.
        TB = _round_up(pl.cdiv(B, 2), _SUBLANE)
    TB = max(min(TB, tb_cap), _SUBLANE)
    grid_b = pl.cdiv(B, TB)

    flops = int(2 * B * D_in * H_p + 2 * B * H_p * D_out_p)
    bytes_accessed = int(
        B * D_in * x_item
        + w1_c.size * c_item + w2_c.size * c_item
        + b1_2d.size * 4 + b2_2d.size * 4
        + B * D_out_p * o_item)
    cost = pl.CostEstimate(flops=flops, transcendentals=0,
                           bytes_accessed=bytes_accessed)

    if not use_h_tiling:
        def _run(single_buffer_weights):
            const_kwargs = ({"pipeline_mode": pl.Buffered(1)}
                            if single_buffer_weights else {})
            return pl.pallas_call(
                _mlp_resident_kernel,
                out_shape=jax.ShapeDtypeStruct((B, D_out_p), out_dtype),
                grid=(grid_b,),
                in_specs=[
                    # x streamed tile-by-tile over batch (edge block handles ragged B).
                    pl.BlockSpec((TB, D_in), lambda i: (i, 0)),
                    # Weights / biases: constant index -> VMEM-resident, no re-DMA.
                    pl.BlockSpec((D_in, H_p), lambda i: (0, 0), **const_kwargs),
                    pl.BlockSpec((1, H_p), lambda i: (0, 0), **const_kwargs),
                    pl.BlockSpec((H_p, D_out_p), lambda i: (0, 0), **const_kwargs),
                    pl.BlockSpec((1, D_out_p), lambda i: (0, 0), **const_kwargs),
                ],
                out_specs=pl.BlockSpec((TB, D_out_p), lambda i: (i, 0)),
                compiler_params=pltpu.CompilerParams(
                    dimension_semantics=("parallel",),
                    vmem_limit_bytes=vmem_limit),
                cost_estimate=cost,
            )(x, w1_c, b1_2d, w2_c, b2_2d)

        try:
            out = _run(True)
        except Exception:
            # Fallback if this jax build rejects Buffered(1) on constant blocks.
            out = _run(False)
    else:
        # TODO(synk): for layers where even a single (D_in, TH)/(TH, D_out_p)
        # weight slice exceeds VMEM, D_in/D_out would also need grid tiling.
        grid_h = H_p // TH
        out = pl.pallas_call(
            _mlp_htiled_kernel,
            out_shape=jax.ShapeDtypeStruct((B, D_out_p), out_dtype),
            grid=(grid_b, grid_h),
            in_specs=[
                pl.BlockSpec((TB, D_in), lambda i, hi: (i, 0)),
                pl.BlockSpec((D_in, TH), lambda i, hi: (0, hi)),
                pl.BlockSpec((1, TH), lambda i, hi: (0, hi)),
                pl.BlockSpec((TH, D_out_p), lambda i, hi: (hi, 0)),
                pl.BlockSpec((1, D_out_p), lambda i, hi: (0, 0)),
            ],
            out_specs=pl.BlockSpec((TB, D_out_p), lambda i, hi: (i, 0)),
            scratch_shapes=[pltpu.VMEM((TB, D_out_p), jnp.float32)],
            compiler_params=pltpu.CompilerParams(
                dimension_semantics=("parallel", "arbitrary"),
                vmem_limit_bytes=vmem_limit),
            cost_estimate=cost,
        )(x, w1_c, b1_2d, w2_c, b2_2d)

    if D_out_p != D_out:
        out = out[:, :D_out]
    return out


# ----------------------------------------------------------------------------
# Pure-JAX reference (mirrors the kernel's dtype handling)
# ----------------------------------------------------------------------------
def reference_mlp(x, w1, b1, w2, b2, compute_dtype=jnp.float32):
    xc = x.astype(compute_dtype)
    w1c = w1.astype(compute_dtype)
    w2c = w2.astype(compute_dtype)
    h = jnp.dot(xc, w1c, preferred_element_type=jnp.float32) + b1
    h = jnp.where(h > 0, h, _NEG_SLOPE * h)
    o = jnp.dot(h.astype(compute_dtype), w2c,
                preferred_element_type=jnp.float32) + b2
    return o.astype(x.dtype)


if __name__ == "__main__":
    key = jax.random.PRNGKey(0)

    def make_params(k, d_in, h, d_out):
        k1, k2, k3, k4 = jax.random.split(k, 4)
        w1 = jax.random.normal(k1, (d_in, h), dtype=jnp.float32) * 0.1
        b1 = jax.random.normal(k2, (h,), dtype=jnp.float32) * 0.1
        w2 = jax.random.normal(k3, (h, d_out), dtype=jnp.float32) * 0.1
        b2 = jax.random.normal(k4, (d_out,), dtype=jnp.float32) * 0.1
        return w1, b1, w2, b2

    def check(out, x, params, tight_dtype, atol_t, rtol_t):
        ref_t = reference_mlp(x, *params, compute_dtype=tight_dtype)
        ref_f = reference_mlp(x, *params, compute_dtype=jnp.float32)
        assert out.shape == ref_f.shape
        assert jnp.allclose(out, ref_t, atol=atol_t, rtol=rtol_t), \
            "mismatch vs compute-dtype reference"
        assert jnp.allclose(out, ref_f, atol=5e-2, rtol=5e-2), \
            "mismatch vs f32 reference"

    # 1) Base case: small MLP, weights-resident path, bf16 MXU operands.
    kx, kp, key = jax.random.split(key, 3)
    x1 = jax.random.normal(kx, (8, 16), dtype=jnp.float32)
    p1 = make_params(kp, 16, 32, 8)
    out1 = jax.block_until_ready(encode_mlp(x1, *p1))
    check(out1, x1, p1, jnp.bfloat16, 1e-4, 1e-3)

    # 2) Ragged batch: no wrapper-side pad of x; last grid step is an edge block.
    kx, kp, key = jax.random.split(key, 3)
    x2 = jax.random.normal(kx, (600, 16), dtype=jnp.float32)
    p2 = make_params(kp, 16, 32, 8)
    out2 = jax.block_until_ready(encode_mlp(x2, *p2, batch_tile=256))
    check(out2, x2, p2, jnp.bfloat16, 1e-4, 1e-3)

    # 3) Forced H-tiled fallback (the path used when resident weights would not
    #    fit v7x VMEM): exercises the f32 accumulator + pl.when init/finalize.
    kx, kp, key = jax.random.split(key, 3)
    x3 = jax.random.normal(kx, (8, 16), dtype=jnp.float32)
    p3 = make_params(kp, 16, 256, 8)
    out3 = jax.block_until_ready(
        encode_mlp(x3, *p3, h_tile=128, max_resident_weight_bytes=0))
    check(out3, x3, p3, jnp.bfloat16, 1e-4, 1e-3)

    # 4) f32 compute path (PyTorch-parity numerics, slower MXU throughput).
    out4 = jax.block_until_ready(encode_mlp(x1, *p1, compute_dtype=jnp.float32))
    check(out4, x1, p1, jnp.float32, 1e-2, 1e-2)

    print("KERNEL_OK")
</pallas_src>

<mosaic_0001>
module attributes {stable_mosaic.version = 11 : i64} {
  func.func @_mlp_resident_kernel(%arg0: i32, %arg1: memref<8x16xf32, #tpu.memory_space<vmem>>, %arg2: memref<16x32xbf16, #tpu.memory_space<vmem>>, %arg3: memref<1x32xf32, #tpu.memory_space<vmem>>, %arg4: memref<32x128xbf16, #tpu.memory_space<vmem>>, %arg5: memref<1x128xf32, #tpu.memory_space<vmem>>, %arg6: memref<8x128xf32, #tpu.memory_space<vmem>>) attributes {dimension_semantics = [#tpu.dimension_semantics<parallel>], iteration_bounds = array<i64: 1>, scalar_prefetch = 0 : i64, scratch_operands = 0 : i64, tpu.core_type = #tpu.core_type<tc>, window_params = [{transform_indices = @transform_0, window_bounds = array<i64: 8, 16>}, {pipeline_mode = #tpu.pipeline_mode<synchronous>, transform_indices = @transform_1, window_bounds = array<i64: 16, 32>}, {pipeline_mode = #tpu.pipeline_mode<synchronous>, transform_indices = @transform_2, window_bounds = array<i64: 1, 32>}, {pipeline_mode = #tpu.pipeline_mode<synchronous>, transform_indices = @transform_3, window_bounds = array<i64: 32, 128>}, {pipeline_mode = #tpu.pipeline_mode<synchronous>, transform_indices = @transform_4, window_bounds = array<i64: 1, 128>}, {transform_indices = @transform_5, window_bounds = array<i64: 8, 128>}]} {
    %c0 = arith.constant 0 : index
    %c0_0 = arith.constant 0 : index
    %0 = vector.load %arg1[%c0, %c0_0] : memref<8x16xf32, #tpu.memory_space<vmem>>, vector<8x16xf32>
    %1 = arith.truncf %0 : vector<8x16xf32> to vector<8x16xbf16>
    %c0_1 = arith.constant 0 : index
    %c0_2 = arith.constant 0 : index
    %2 = vector.load %arg2[%c0_1, %c0_2] : memref<16x32xbf16, #tpu.memory_space<vmem>>, vector<16x32xbf16>
    %cst = arith.constant dense<0.000000e+00> : vector<8x32xf32>
    %3 = tpu.matmul %1, %2, %cst {dimension_numbers = #tpu.dot_dimension_numbers<[1], [0], [0], [1], [0, 0, 1, 1], [], []>} : vector<8x16xbf16>, vector<16x32xbf16>, vector<8x32xf32> -> vector<8x32xf32>
    %c0_3 = arith.constant 0 : index
    %c0_4 = arith.constant 0 : index
    %4 = vector.load %arg3[%c0_3, %c0_4] : memref<1x32xf32, #tpu.memory_space<vmem>>, vector<1x32xf32>
    %5 = vector.broadcast %4 : vector<1x32xf32> to vector<8x32xf32>
    %6 = arith.addf %3, %5 : vector<8x32xf32>
    %cst_5 = arith.constant 0.000000e+00 : f32
    %7 = vector.broadcast %cst_5 : f32 to vector<8x32xf32>
    %8 = arith.cmpf ogt, %6, %7 : vector<8x32xf32>
    %cst_6 = arith.constant 0.00999999977 : f32
    %9 = vector.broadcast %cst_6 : f32 to vector<8x32xf32>
    %10 = arith.mulf %9, %6 : vector<8x32xf32>
    %11 = arith.select %8, %6, %10 : vector<8x32xi1>, vector<8x32xf32>
    %12 = arith.truncf %11 : vector<8x32xf32> to vector<8x32xbf16>
    %c0_7 = arith.constant 0 : index
    %c0_8 = arith.constant 0 : index
    %13 = vector.load %arg4[%c0_7, %c0_8] : memref<32x128xbf16, #tpu.memory_space<vmem>>, vector<32x128xbf16>
    %cst_9 = arith.constant dense<0.000000e+00> : vector<8x128xf32>
    %14 = tpu.matmul %12, %13, %cst_9 {dimension_numbers = #tpu.dot_dimension_numbers<[1], [0], [0], [1], [0, 0, 1, 1], [], []>} : vector<8x32xbf16>, vector<32x128xbf16>, vector<8x128xf32> -> vector<8x128xf32>
    %c0_10 = arith.constant 0 : index
    %c0_11 = arith.constant 0 : index
    %15 = vector.load %arg5[%c0_10, %c0_11] : memref<1x128xf32, #tpu.memory_space<vmem>>, vector<1x128xf32>
    %16 = vector.broadcast %15 : vector<1x128xf32> to vector<8x128xf32>
    %17 = arith.addf %14, %16 : vector<8x128xf32>
    %c0_12 = arith.constant 0 : index
    %c0_13 = arith.constant 0 : index
    %18 = vector.load %arg6[%c0_12, %c0_13] : memref<8x128xf32, #tpu.memory_space<vmem>>, vector<8x128xf32>
    tpu.vector_store %arg6[%c0_12, %c0_13], %17 {strides = array<i32>} : memref<8x128xf32, #tpu.memory_space<vmem>>, vector<8x128xf32>,
    return
  }
  func.func @transform_0(%arg0: i32) -> (i32, i32) {
    %c0_i32 = arith.constant 0 : i32
    %c0_i32_0 = arith.constant 0 : i32
    return %arg0, %c0_i32 : i32, i32
  }
  func.func @transform_1(%arg0: i32) -> (i32, i32) {
    %c0_i32 = arith.constant 0 : i32
    %c0_i32_0 = arith.constant 0 : i32
    %c0_i32_1 = arith.constant 0 : i32
    return %c0_i32, %c0_i32_0 : i32, i32
  }
  func.func @transform_2(%arg0: i32) -> (i32, i32) {
    %c0_i32 = arith.constant 0 : i32
    %c0_i32_0 = arith.constant 0 : i32
    %c0_i32_1 = arith.constant 0 : i32
    return %c0_i32, %c0_i32_0 : i32, i32
  }
  func.func @transform_3(%arg0: i32) -> (i32, i32) {
    %c0_i32 = arith.constant 0 : i32
    %c0_i32_0 = arith.constant 0 : i32
    %c0_i32_1 = arith.constant 0 : i32
    return %c0_i32, %c0_i32_0 : i32, i32
  }
  func.func @transform_4(%arg0: i32) -> (i32, i32) {
    %c0_i32 = arith.constant 0 : i32
    %c0_i32_0 = arith.constant 0 : i32
    %c0_i32_1 = arith.constant 0 : i32
    return %c0_i32, %c0_i32_0 : i32, i32
  }
  func.func @transform_5(%arg0: i32) -> (i32, i32) {
    %c0_i32 = arith.constant 0 : i32
    %c0_i32_0 = arith.constant 0 : i32
    return %arg0, %c0_i32 : i32, i32
  }
}

module attributes {stable_mosaic.version = 11 : i64} {
  func.func @_mlp_resident_kernel(%arg0: i32, %arg1: memref<8x16xf32, #tpu.memory_space<vmem>>, %arg2: memref<16x32xbf16, #tpu.memory_space<vmem>>, %arg3: memref<1x32xf32, #tpu.memory_space<vmem>>, %arg4: memref<32x128xbf16, #tpu.memory_space<vmem>>, %arg5: memref<1x128xf32, #tpu.memory_space<vmem>>, %arg6: memref<8x128xf32, #tpu.memory_space<vmem>>) attributes {dimension_semantics = [#tpu.dimension_semantics<parallel>], iteration_bounds = array<i64: 1>, scalar_prefetch = 0 : i64, scratch_operands = 0 : i64, tpu.core_type = #tpu.core_type<tc>, window_params = [{transform_indices = @transform_0, window_bounds = array<i64: 8, 16>}, {pipeline_mode = #tpu.pipeline_mode<synchronous>, transform_indices = @transform_1, window_bounds = array<i64: 16, 32>}, {pipeline_mode = #tpu.pipeline_mode<synchronous>, transform_indices = @transform_2, window_bounds = array<i64: 1, 32>}, {pipeline_mode = #tpu.pipeline_mode<synchronous>, transform_indices = @transform_3, window_bounds = array<i64: 32, 128>}, {pipeline_mode = #tpu.pipeline_mode<synchronous>, transform_indices = @transform_4, window_bounds = array<i64: 1, 128>}, {transform_indices = @transform_5, window_bounds = array<i64: 8, 128>}]} {
    %c0 = arith.constant 0 : index
    %c0_0 = arith.constant 0 : index
    %0 = vector.load %arg1[%c0, %c0_0] : memref<8x16xf32, #tpu.memory_space<vmem>>, vector<8x16xf32>
    %1 = arith.truncf %0 : vector<8x16xf32> to vector<8x16xbf16>
    %c0_1 = arith.constant 0 : index
    %c0_2 = arith.constant 0 : index
    %2 = vector.load %arg2[%c0_1, %c0_2] : memref<16x32xbf16, #tpu.memory_space<vmem>>, vector<16x32xbf16>
    %cst = arith.constant dense<0.000000e+00> : vector<8x32xf32>
    %3 = tpu.matmul %1, %2, %cst {dimension_numbers = #tpu.dot_dimension_numbers<[1], [0], [0], [1], [0, 0, 1, 1], [], []>} : vector<8x16xbf16>, vector<16x32xbf16>, vector<8x32xf32> -> vector<8x32xf32>
    %c0_3 = arith.constant 0 : index
    %c0_4 = arith.constant 0 : index
    %4 = vector.load %arg3[%c0_3, %c0_4] : memref<1x32xf32, #tpu.memory_space<vmem>>, vector<1x32xf32>
    %5 = vector.broadcast %4 : vector<1x32xf32> to vector<8x32xf32>
    %6 = arith.addf %3, %5 : vector<8x32xf32>
    %cst_5 = arith.constant 0.000000e+00 : f32
    %7 = vector.broadcast %cst_5 : f32 to vector<8x32xf32>
    %8 = arith.cmpf ogt, %6, %7 : vector<8x32xf32>
    %cst_6 = arith.constant 0.00999999977 : f32
    %9 = vector.broadcast %cst_6 : f32 to vector<8x32xf32>
    %10 = arith.mulf %9, %6 : vector<8x32xf32>
    %11 = arith.select %8, %6, %10 : vector<8x32xi1>, vector<8x32xf32>
    %12 = arith.truncf %11 : vector<8x32xf32> to vector<8x32xbf16>
    %c0_7 = arith.constant 0 : index
    %c0_8 = arith.constant 0 : index
    %13 = vector.load %arg4[%c0_7, %c0_8] : memref<32x128xbf16, #tpu.memory_space<vmem>>, vector<32x128xbf16>
    %cst_9 = arith.constant dense<0.000000e+00> : vector<8x128xf32>
    %14 = tpu.matmul %12, %13, %cst_9 {dimension_numbers = #tpu.dot_dimension_numbers<[1], [0], [0], [1], [0, 0, 1, 1], [], []>} : vector<8x32xbf16>, vector<32x128xbf16>, vector<8x128xf32> -> vector<8x128xf32>
    %c0_10 = arith.constant 0 : index
    %c0_11 = arith.constant 0 : index
    %15 = vector.load %arg5[%c0_10, %c0_11] : memref<1x128xf32, #tpu.memory_space<vmem>>, vector<1x128xf32>
    %16 = vector.broadcast %15 : vector<1x128xf32> to vector<8x128xf32>
    %17 = arith.addf %14, %16 : vector<8x128xf32>
    %c0_12 = arith.constant 0 : index
    %c0_13 = arith.constant 0 : index
    %18 = vector.load %arg6[%c0_12, %c0_13] : memref<8x128xf32, #tpu.memory_space<vmem>>, vector<8x128xf32>
    tpu.vector_store %arg6[%c0_12, %c0_13], %17 {strides = array<i32>} : memref<8x128xf32, #tpu.memory_space<vmem>>, vector<8x128xf32>,
    return
  }
  func.func @transform_0(%arg0: i32) -> (i32, i32) {
    %c0_i32 = arith.constant 0 : i32
    %c0_i32_0 = arith.constant 0 : i32
    return %arg0, %c0_i32 : i32, i32
  }
  func.func @transform_1(%arg0: i32) -> (i32, i32) {
    %c0_i32 = arith.constant 0 : i32
    %c0_i32_0 = arith.constant 0 : i32
    %c0_i32_1 = arith.constant 0 : i32
    return %c0_i32, %c0_i32_0 : i32, i32
  }
  func.func @transform_2(%arg0: i32) -> (i32, i32) {
    %c0_i32 = arith.constant 0 : i32
    %c0_i32_0 = arith.constant 0 : i32
    %c0_i32_1 = arith.constant 0 : i32
    return %c0_i32, %c0_i32_0 : i32, i32
  }
  func.func @transform_3(%arg0: i32) -> (i32, i32) {
    %c0_i32 = arith.constant 0 : i32
    %c0_i32_0 = arith.constant 0 : i32
    %c0_i32_1 = arith.constant 0 : i32
    return %c0_i32, %c0_i32_0 : i32, i32
  }
  func.func @transform_4(%arg0: i32) -> (i32, i32) {
    %c0_i32 = arith.constant 0 : i32
    %c0_i32_0 = arith.constant 0 : i32
    %c0_i32_1 = arith.constant 0 : i32
    return %c0_i32, %c0_i32_0 : i32, i32
  }
  func.func @transform_5(%arg0: i32) -> (i32, i32) {
    %c0_i32 = arith.constant 0 : i32
    %c0_i32_0 = arith.constant 0 : i32
    return %arg0, %c0_i32 : i32, i32
  }
}

</mosaic_0001>

<bundles_post_ra>
// kernel: tpu_custom_call.1
= control target key start
LH: loop header
LB: loop body
LE: loop exit
PB: predicated region body
PF: predicated region fallthrough
CT: control target
= control target key end

     0   :  { %10 = vsyncpa [#allocation3], 0  ;;  %s439_s0 = inlined_call_operand.hbm [shape: f32[8,16], index: 0, kind: input, shape index: {}]   ;;  %s440_s1 = inlined_call_operand.hbm [shape: bf16[16,32], index: 1, kind: input, shape index: {}]   ;;  %s441_s2 = inlined_call_operand.vmem [shape: f32[1,32], index: 2, kind: input, shape index: {}]   ;;  %s442_s3 = inlined_call_operand.hbm [shape: bf16[32,128], index: 3, kind: input, shape index: {}]   ;;  %s443_s4 = inlined_call_operand.vmem [shape: f32[1,128], index: 4, kind: input, shape index: {}]   ;;  %s444_s5 = inlined_call_operand.hbm [shape: f32[8,128], index: 5, kind: output, shape index: {}]  }
   0x1   :  { %11 = vsyncpa [#allocation6], 0 }
   0x2   :  { %12 = vsyncpa [#allocation4], 0  ;;  %s341_s18 = smov [#allocation5]   ;;  %s247_s22 = scalar_lea.hbm %s440_s1, 128 }
   0x3   :  { %s28_s19 = sshll.u32 %s341_s18, 4  ;;  %p248_p0 = scmp.ne.s32.totalorder %s440_s1, %s247_s22  ;;  %s29_s19 = int_to_ptr.vmem [resolvable:$true] %s28_s19 }
   0x4   :  { %p251_p1 = scmp.lt.u32.totalorder %s247_s22, %s440_s1 }
   0x6   :  { %p253_p2 = pnand %p251_p1, %p248_p0 }
   0x8   :  { %256 = shalt.err (!%p253_p2)
}
   0x9   :  { %s257_s27 = scalar_lea.vmem %s29_s19, 128  ;;  %p262_p4 = scmp.lt.s32.totalorder %s29_s19, %s29_s19 }
   0xa   :  { %p258_p3 = scmp.ne.s32.totalorder %s29_s19, %s257_s27  ;;  %p263_p5 = scmp.lt.s32.totalorder %s257_s27, %s257_s27 }
   0xc   :  { %p264_p6 = por %p263_p5, %p262_p4 }
   0xe   :  { %p265_p7 = pnand %p264_p6, %p258_p3 }
  0x10   :  { %268 = shalt.err (!%p265_p7)
}
  0x11   :  { %s342_s28 = smov 64   ;;  %s343_s29 = smov 4  }
  0x12   :  { %34 = dma.hbm_to_vmem [thread:$0]  %s440_s1, 128, %s29_s19, [#allocation6], %s342_s28, %s342_s28, %s343_s29  }
  0x13   :  { %s344_s7 = smov [#allocation2]   ;;  %s345_s9 = smov [#allocation7]  }
  0x14   :  { %s19_s8 = sshll.u32 %s344_s7, 4  ;;  %s42_s10 = sshll.u32 %s345_s9, 4  ;;  %s20_s8 = int_to_ptr.vmem [resolvable:$true] %s19_s8  ;;  %s43_s10 = int_to_ptr.vmem [resolvable:$true] %s42_s10 }
  0x15   :  { %s269_s13 = scalar_lea.hbm %s439_s0, 128 }
  0x16   :  { %p270_p8 = scmp.ne.s32.totalorder %s439_s0, %s269_s13  ;;  %p273_p9 = scmp.lt.u32.totalorder %s269_s13, %s439_s0 }
  0x18   :  { %p275_p10 = pnand %p273_p9, %p270_p8 }
  0x1a   :  { %278 = shalt.err (!%p275_p10)
}
  0x1b   :  { %s279_s1 = scalar_lea.vmem %s20_s8, 128  ;;  %p284_p12 = scmp.lt.s32.totalorder %s20_s8, %s20_s8 }
  0x1c   :  { %p280_p11 = scmp.ne.s32.totalorder %s20_s8, %s279_s1  ;;  %p285_p13 = scmp.lt.s32.totalorder %s279_s1, %s279_s1 }
  0x1e   :  { %p286_p0 = por %p285_p13, %p284_p12 }
  0x20   :  { %p287_p1 = pnand %p286_p0, %p280_p11 }
  0x22   :  { %290 = shalt.err (!%p287_p1)
}
  0x23   :  { %22 = dma.hbm_to_vmem [thread:$0]  %s439_s0, 128, %s20_s8, [#allocation3]  }
  0x24   :  { %s291_s22 = scalar_lea.hbm %s442_s3, 256 }
  0x25   :  { %p292_p2 = scmp.ne.s32.totalorder %s442_s3, %s291_s22  ;;  %p295_p3 = scmp.lt.u32.totalorder %s291_s22, %s442_s3 }
  0x27   :  { %p297_p4 = pnand %p295_p3, %p292_p2 }
  0x29   :  { %300 = shalt.err (!%p297_p4)
}
  0x2a   :  { %s301_s27 = scalar_lea.vmem %s43_s10, 256  ;;  %p306_p6 = scmp.lt.s32.totalorder %s43_s10, %s43_s10 }
  0x2b   :  { %p302_p5 = scmp.ne.s32.totalorder %s43_s10, %s301_s27  ;;  %p307_p7 = scmp.lt.s32.totalorder %s301_s27, %s301_s27 }
  0x2d   :  { %p308_p8 = por %p307_p7, %p306_p6 }
  0x2f   :  { %p309_p9 = pnand %p308_p8, %p302_p5 }
  0x31   :  { %312 = shalt.err (!%p309_p9)
}
  0x32   :  { %48 = dma.hbm_to_vmem [thread:$0]  %s442_s3, 256, %s43_s10, [#allocation6], %s342_s28, %s342_s28, %s343_s29  }
  0x33   :  { %335 = dma.done.wait [#allocation3], 128  }
  0x34   :  { %336 = vsyncadd [#allocation3], 4294967168 }
  0x35   :  { %337 = dma.done.wait [#allocation6], 384  }
  0x36   :  { %338 = vsyncadd [#allocation6], 4294966912  ;;  %v346_v0 = vmov 0.0   ;;  %vm347_vm0 = vmmov 0   ;;  %v244_v1 = vld [vmem:[#allocation5] sm:$0xff]   ;;  %v61_v2 = vld [vmem:[#allocation2] sm:$0xff] }
  0x37   :  { %222 = vmatprep.subr.bf16.mxu0 %v346_v0  ;;  %224 = vmatprep.mubr.msk.bf16.mxu0 %vm347_vm0, %v346_v0  ;;  %vm78_vm1 = vcmask 130048   ;;  %v62_v3 = vpack.c.bf16 %v61_v2, %v61_v2  ;;  %v245_v4 = vld [vmem:[#allocation7] sm:$0xff]   ;;  %v246_v5 = vld [vmem:[#allocation7 + $0x8] sm:$0xff]   ;;  %v210_v6 = vld [vmem:[%s441_s2] ss:$0 sm:$0xff]  ;;  %vm149_vm3 = vcmask 261120  }
  0x38   :  { %228 = vmatprep.subr.bf16.mxu1 %v346_v0  ;;  %232 = vmatprep.mubr.msk.bf16.mxu1 %vm347_vm0, %v346_v0  ;;  %v213_v15 = vld [vmem:[%s443_s4] ss:$0 sm:$0xff]  ;;  %s348_s7 = smov [#allocation8]  }
  0x39   :  { %223 = vmatpush3.bf16.msra.mxu0 %v244_v1  ;;  %229 = vmatpush3.bf16.msra.mxu1 %v245_v4  ;;  %s200_s8 = sshll.u32 %s348_s7, 4  ;;  %s201_s8 = int_to_ptr.vmem [resolvable:$true] %s200_s8 }
  0x3a   :  { %230 = vmatprep.subr.bf16.mxu1 %v346_v0  ;;  %s313_s2 = scalar_lea.vmem %s201_s8, 128  ;;  %p318_p11 = scmp.lt.s32.totalorder %s201_s8, %s201_s8 }
  0x3b   :  { %p314_p10 = scmp.ne.s32.totalorder %s201_s8, %s313_s2  ;;  %p319_p12 = scmp.lt.s32.totalorder %s313_s2, %s313_s2 }
  0x3c   :  { %225 = vmatmul.mubr.msk.bf16.vlgmr.msra.gmra.mrb[0].mxu0 %vm78_vm1, %v62_v3 }
  0x3d   :  { %231 = vmatpush3.bf16.msra.mxu1 %v246_v5  ;;  %p320_p13 = por %p319_p12, %p318_p11 }
  0x3f   :  { %p321_p0 = pnand %p320_p13, %p314_p10 }
 0x10f   :  { %v116_v7 = vpop.f32.mrb[0].mxu0 }
 0x110   :  { %v117_v8 = vadd.f32 %v210_v6, %v116_v7  ;;  %v226_v9 = vpop.f32.mrb[1].mxu0 }
 0x111   :  { %v119_v10 = vpop.f32.mrb[2].mxu0 }
 0x112   :  { %vm122_vm2 = vcmp.gt.f32.partialorder %v117_v8, 0.0  ;;  %v123_v11 = vmul.f32 0.01, %v117_v8  ;;  %v227_v12 = vpop.f32.mrb[3].mxu0 }
 0x114   :  { %v124_v13 = vsel %vm122_vm2, %v117_v8, %v123_v11 }
 0x115   :  { %v125_v14 = vpack.c.bf16 %v124_v13, %v124_v13 }
 0x117   :  { %233 = vmatmul.mubr.msk.bf16.vlgmr.msra.gmra.mrb[0].mxu1 %vm149_vm3, %v125_v14 }
 0x1ea   :  { %v187_v16 = vpop.f32.mrb[0].mxu1 }
 0x1eb   :  { %v188_v17 = vadd.f32 %v213_v15, %v187_v16  ;;  %v234_v18 = vpop.f32.mrb[1].mxu1 }
 0x1ec   :  { %v190_v19 = vpop.f32.mrb[2].mxu1 }
 0x1ed   :  { %193 = vst [vmem:[#allocation8] sm:$0xff] %v188_v17  ;;  %v235_v20 = vpop.f32.mrb[3].mxu1 }
 0x1ee   :  { %324 = shalt.err (!%p321_p0)
}
 0x1ef   :  { %s325_s4 = scalar_lea.hbm %s444_s5, 128 }
 0x1f0   :  { %p326_p1 = scmp.ne.s32.totalorder %s444_s5, %s325_s4  ;;  %p329_p2 = scmp.lt.u32.totalorder %s325_s4, %s444_s5 }
 0x1f2   :  { %p331_p3 = pnand %p329_p2, %p326_p1 }
 0x1f4   :  { %334 = shalt.err (!%p331_p3)
}
 0x1f5   :  { %203 = dma.vmem_to_hbm [thread:$0]  %s201_s8, 128, %s444_s5, [#allocation4]  }
 0x1f6   :  { %339 = dma.done.wait [#allocation4], 128  }
 0x1f7   :  { %340 = vsyncadd [#allocation4], 4294967168 }
 0x1f8   :  { %207 = vsyncpa [#allocation3], 1 }
 0x1f9   :  { %208 = vsyncpa [#allocation6], 1 }
 0x1fa   :  { %209 = vsyncpa [#allocation4], 1 }

// kernel: tpu_custom_call.1
= control target key start
LH: loop header
LB: loop body
LE: loop exit
PB: predicated region body
PF: predicated region fallthrough
CT: control target
= control target key end

     0   :  { %10 = vsyncpa [#allocation3], 0  ;;  %s439_s0 = inlined_call_operand.hbm [shape: f32[8,16], index: 0, kind: input, shape index: {}]   ;;  %s440_s1 = inlined_call_operand.hbm [shape: bf16[16,32], index: 1, kind: input, shape index: {}]   ;;  %s441_s2 = inlined_call_operand.vmem [shape: f32[1,32], index: 2, kind: input, shape index: {}]   ;;  %s442_s3 = inlined_call_operand.hbm [shape: bf16[32,128], index: 3, kind: input, shape index: {}]   ;;  %s443_s4 = inlined_call_operand.vmem [shape: f32[1,128], index: 4, kind: input, shape index: {}]   ;;  %s444_s5 = inlined_call_operand.hbm [shape: f32[8,128], index: 5, kind: output, shape index: {}]  }
   0x1   :  { %11 = vsyncpa [#allocation6], 0 }
   0x2   :  { %12 = vsyncpa [#allocation4], 0  ;;  %s341_s18 = smov [#allocation5]   ;;  %s247_s22 = scalar_lea.hbm %s440_s1, 128 }
   0x3   :  { %s28_s19 = sshll.u32 %s341_s18, 4  ;;  %p248_p0 = scmp.ne.s32.totalorder %s440_s1, %s247_s22  ;;  %s29_s19 = int_to_ptr.vmem [resolvable:$true] %s28_s19 }
   0x4   :  { %p251_p1 = scmp.lt.u32.totalorder %s247_s22, %s440_s1 }
   0x6   :  { %p253_p2 = pnand %p251_p1, %p248_p0 }
   0x8   :  { %256 = shalt.err (!%p253_p2)
}
   0x9   :  { %s257_s27 = scalar_lea.vmem %s29_s19, 128  ;;  %p262_p4 = scmp.lt.s32.totalorder %s29_s19, %s29_s19 }
   0xa   :  { %p258_p3 = scmp.ne.s32.totalorder %s29_s19, %s257_s27  ;;  %p263_p5 = scmp.lt.s32.totalorder %s257_s27, %s257_s27 }
   0xc   :  { %p264_p6 = por %p263_p5, %p262_p4 }
   0xe   :  { %p265_p7 = pnand %p264_p6, %p258_p3 }
  0x10   :  { %268 = shalt.err (!%p265_p7)
}
  0x11   :  { %s342_s28 = smov 64   ;;  %s343_s29 = smov 4  }
  0x12   :  { %34 = dma.hbm_to_vmem [thread:$0]  %s440_s1, 128, %s29_s19, [#allocation6], %s342_s28, %s342_s28, %s343_s29  }
  0x13   :  { %s344_s7 = smov [#allocation2]   ;;  %s345_s9 = smov [#allocation7]  }
  0x14   :  { %s19_s8 = sshll.u32 %s344_s7, 4  ;;  %s42_s10 = sshll.u32 %s345_s9, 4  ;;  %s20_s8 = int_to_ptr.vmem [resolvable:$true] %s19_s8  ;;  %s43_s10 = int_to_ptr.vmem [resolvable:$true] %s42_s10 }
  0x15   :  { %s269_s13 = scalar_lea.hbm %s439_s0, 128 }
  0x16   :  { %p270_p8 = scmp.ne.s32.totalorder %s439_s0, %s269_s13  ;;  %p273_p9 = scmp.lt.u32.totalorder %s269_s13, %s439_s0 }
  0x18   :  { %p275_p10 = pnand %p273_p9, %p270_p8 }
  0x1a   :  { %278 = shalt.err (!%p275_p10)
}
  0x1b   :  { %s279_s1 = scalar_lea.vmem %s20_s8, 128  ;;  %p284_p12 = scmp.lt.s32.totalorder %s20_s8, %s20_s8 }
  0x1c   :  { %p280_p11 = scmp.ne.s32.totalorder %s20_s8, %s279_s1  ;;  %p285_p13 = scmp.lt.s32.totalorder %s279_s1, %s279_s1 }
  0x1e   :  { %p286_p0 = por %p285_p13, %p284_p12 }
  0x20   :  { %p287_p1 = pnand %p286_p0, %p280_p11 }
  0x22   :  { %290 = shalt.err (!%p287_p1)
}
  0x23   :  { %22 = dma.hbm_to_vmem [thread:$0]  %s439_s0, 128, %s20_s8, [#allocation3]  }
  0x24   :  { %s291_s22 = scalar_lea.hbm %s442_s3, 256 }
  0x25   :  { %p292_p2 = scmp.ne.s32.totalorder %s442_s3, %s291_s22  ;;  %p295_p3 = scmp.lt.u32.totalorder %s291_s22, %s442_s3 }
  0x27   :  { %p297_p4 = pnand %p295_p3, %p292_p2 }
  0x29   :  { %300 = shalt.err (!%p297_p4)
}
  0x2a   :  { %s301_s27 = scalar_lea.vmem %s43_s10, 256  ;;  %p306_p6 = scmp.lt.s32.totalorder %s43_s10, %s43_s10 }
  0x2b   :  { %p302_p5 = scmp.ne.s32.totalorder %s43_s10, %s301_s27  ;;  %p307_p7 = scmp.lt.s32.totalorder %s301_s27, %s301_s27 }
  0x2d   :  { %p308_p8 = por %p307_p7, %p306_p6 }
  0x2f   :  { %p309_p9 = pnand %p308_p8, %p302_p5 }
  0x31   :  { %312 = shalt.err (!%p309_p9)
}
  0x32   :  { %48 = dma.hbm_to_vmem [thread:$0]  %s442_s3, 256, %s43_s10, [#allocation6], %s342_s28, %s342_s28, %s343_s29  }
  0x33   :  { %335 = dma.done.wait [#allocation3], 128  }
  0x34   :  { %336 = vsyncadd [#allocation3], 4294967168 }
  0x35   :  { %337 = dma.done.wait [#allocation6], 384  }
  0x36   :  { %338 = vsyncadd [#allocation6], 4294966912  ;;  %v346_v0 = vmov 0.0   ;;  %vm347_vm0 = vmmov 0   ;;  %v244_v1 = vld [vmem:[#allocation5] sm:$0xff]   ;;  %v61_v2 = vld [vmem:[#allocation2] sm:$0xff] }
  0x37   :  { %222 = vmatprep.subr.bf16.mxu0 %v346_v0  ;;  %224 = vmatprep.mubr.msk.bf16.mxu0 %vm347_vm0, %v346_v0  ;;  %vm78_vm1 = vcmask 130048   ;;  %v62_v3 = vpack.c.bf16 %v61_v2, %v61_v2  ;;  %v245_v4 = vld [vmem:[#allocation7] sm:$0xff]   ;;  %v246_v5 = vld [vmem:[#allocation7 + $0x8] sm:$0xff]   ;;  %v210_v6 = vld [vmem:[%s441_s2] ss:$0 sm:$0xff]  ;;  %vm149_vm3 = vcmask 261120  }
  0x38   :  { %228 = vmatprep.subr.bf16.mxu1 %v346_v0  ;;  %232 = vmatprep.mubr.msk.bf16.mxu1 %vm347_vm0, %v346_v0  ;;  %v213_v15 = vld [vmem:[%s443_s4] ss:$0 sm:$0xff]  ;;  %s348_s7 = smov [#allocation8]  }
  0x39   :  { %223 = vmatpush3.bf16.msra.mxu0 %v244_v1  ;;  %229 = vmatpush3.bf16.msra.mxu1 %v245_v4  ;;  %s200_s8 = sshll.u32 %s348_s7, 4  ;;  %s201_s8 = int_to_ptr.vmem [resolvable:$true] %s200_s8 }
  0x3a   :  { %230 = vmatprep.subr.bf16.mxu1 %v346_v0  ;;  %s313_s2 = scalar_lea.vmem %s201_s8, 128  ;;  %p318_p11 = scmp.lt.s32.totalorder %s201_s8, %s201_s8 }
  0x3b   :  { %p314_p10 = scmp.ne.s32.totalorder %s201_s8, %s313_s2  ;;  %p319_p12 = scmp.lt.s32.totalorder %s313_s2, %s313_s2 }
  0x3c   :  { %225 = vmatmul.mubr.msk.bf16.vlgmr.msra.gmra.mrb[0].mxu0 %vm78_vm1, %v62_v3 }
  0x3d   :  { %231 = vmatpush3.bf16.msra.mxu1 %v246_v5  ;;  %p320_p13 = por %p319_p12, %p318_p11 }
  0x3f   :  { %p321_p0 = pnand %p320_p13, %p314_p10 }
 0x10f   :  { %v116_v7 = vpop.f32.mrb[0].mxu0 }
 0x110   :  { %v117_v8 = vadd.f32 %v210_v6, %v116_v7  ;;  %v226_v9 = vpop.f32.mrb[1].mxu0 }
 0x111   :  { %v119_v10 = vpop.f32.mrb[2].mxu0 }
 0x112   :  { %vm122_vm2 = vcmp.gt.f32.partialorder %v117_v8, 0.0  ;;  %v123_v11 = vmul.f32 0.01, %v117_v8  ;;  %v227_v12 = vpop.f32.mrb[3].mxu0 }
 0x114   :  { %v124_v13 = vsel %vm122_vm2, %v117_v8, %v123_v11 }
 0x115   :  { %v125_v14 = vpack.c.bf16 %v124_v13, %v124_v13 }
 0x117   :  { %233 = vmatmul.mubr.msk.bf16.vlgmr.msra.gmra.mrb[0].mxu1 %vm149_vm3, %v125_v14 }
 0x1ea   :  { %v187_v16 = vpop.f32.mrb[0].mxu1 }
 0x1eb   :  { %v188_v17 = vadd.f32 %v213_v15, %v187_v16  ;;  %v234_v18 = vpop.f32.mrb[1].mxu1 }
 0x1ec   :  { %v190_v19 = vpop.f32.mrb[2].mxu1 }
 0x1ed   :  { %193 = vst [vmem:[#allocation8] sm:$0xff] %v188_v17  ;;  %v235_v20 = vpop.f32.mrb[3].mxu1 }
 0x1ee   :  { %324 = shalt.err (!%p321_p0)
}
 0x1ef   :  { %s325_s4 = scalar_lea.hbm %s444_s5, 128 }
 0x1f0   :  { %p326_p1 = scmp.ne.s32.totalorder %s444_s5, %s325_s4  ;;  %p329_p2 = scmp.lt.u32.totalorder %s325_s4, %s444_s5 }
 0x1f2   :  { %p331_p3 = pnand %p329_p2, %p326_p1 }
 0x1f4   :  { %334 = shalt.err (!%p331_p3)
}
 0x1f5   :  { %203 = dma.vmem_to_hbm [thread:$0]  %s201_s8, 128, %s444_s5, [#allocation4]  }
 0x1f6   :  { %339 = dma.done.wait [#allocation4], 128  }
 0x1f7   :  { %340 = vsyncadd [#allocation4], 4294967168 }
 0x1f8   :  { %207 = vsyncpa [#allocation3], 1 }
 0x1f9   :  { %208 = vsyncpa [#allocation6], 1 }
 0x1fa   :  { %209 = vsyncpa [#allocation4], 1 }

</bundles_post_ra>
